<compile_context>
chip_gen: v5e
topology: v5e:2x2
jax: 0.10.0
libtpu: 0.0.40
codegen_flags: <defaults>
</compile_context>

<pallas_src>
import functools

import jax
import jax.numpy as jnp
from jax.experimental import pallas as pl
from jax.experimental.pallas import tpu as pltpu


def _round_up(n, m):
    return ((n + m - 1) // m) * m


def _cdiv(a, b):
    return -(-a // b)


def mlplus_kernel(x_ref, w1_ref, b1_ref, w2_ref, b2_ref,
                  w3_ref, b3_ref, w4_ref, b4_ref, o_ref):
    # bf16 cast of the activation block happens here (not as an XLA pre-pass).
    x = x_ref[...].astype(w1_ref.dtype)
    # Layer 1: Linear(+folded BN) -> ReLU   (dropout = identity in eval)
    h = jnp.dot(x, w1_ref[...], preferred_element_type=jnp.float32)
    h = jnp.maximum(h + b1_ref[...], 0.0)
    # Layer 2
    h = jnp.dot(h.astype(w2_ref.dtype), w2_ref[...],
                preferred_element_type=jnp.float32)
    h = jnp.maximum(h + b2_ref[...], 0.0)
    # Layer 3
    h = jnp.dot(h.astype(w3_ref.dtype), w3_ref[...],
                preferred_element_type=jnp.float32)
    h = jnp.maximum(h + b3_ref[...], 0.0)
    # Layer 4: plain Linear (no BN / ReLU); output is lane-padded to 128.
    out = jnp.dot(h.astype(w4_ref.dtype), w4_ref[...],
                  preferred_element_type=jnp.float32) + b4_ref[...]
    o_ref[...] = out.astype(o_ref.dtype)      # bf16 writeback


def _fold_bn(w, b, gamma, beta, mean, var, eps=1e-5):
    """Fold BatchNorm1d (eval mode) into the preceding Linear.
    y = ((x @ w + b) - mean) / sqrt(var+eps) * gamma + beta
      =  x @ (w * s) + (b * s + t),  s = gamma/sqrt(var+eps), t = beta - mean*s
    """
    s = gamma / jnp.sqrt(var + eps)
    t = beta - mean * s
    return w * s[None, :], b * s + t


def prepare_params(params, num_classes):
    """One-time parameter prep (hoisted out of the per-call path):
    bf16 weights for the MXU, layer-4 output padded to 128 lanes, biases as
    (1, d) f32 rows for clean lane broadcasting."""
    (w1, b1), (w2, b2), (w3, b3), (w4, b4) = params
    n_pad = _round_up(max(num_classes, 128), 128)       # 4 -> 128
    w4_p = jnp.pad(w4, ((0, 0), (0, n_pad - num_classes)))
    b4_p = jnp.pad(b4, (0, n_pad - num_classes))
    prepped = (
        w1.astype(jnp.bfloat16), b1[None, :].astype(jnp.float32),
        w2.astype(jnp.bfloat16), b2[None, :].astype(jnp.float32),
        w3.astype(jnp.bfloat16), b3[None, :].astype(jnp.float32),
        w4_p.astype(jnp.bfloat16), b4_p[None, :].astype(jnp.float32),
    )
    # Materialize now so nothing is fused into later calls.
    return jax.block_until_ready(prepped)


@functools.partial(jax.jit, static_argnames=("num_classes",))
def mlplus_forward(x, prepped, *, num_classes):
    w1, b1, w2, b2, w3, b3, w4, b4 = prepped
    B = x.shape[0]
    input_dim = w1.shape[0]                  # 310 (unpadded: full-dim block)
    n_pad = w4.shape[1]                      # 128

    x2d = x.reshape(B, -1)                   # x.view(x.shape[0], -1); no copy

    # Batch tiling: balanced tiles, >=2 grid steps (v7x megacore sharding),
    # ~512-row target amortizes per-grid-step overhead on v5e/v6e while
    # keeping live VMEM blocks a few MiB (well under the 16 MiB v5e scoped
    # default).  Ragged last tile is handled by masked edge reads/writes.
    num_tiles = max(2, _cdiv(B, 512))
    tile_b = _round_up(_cdiv(B, num_tiles), 8)
    grid = (_cdiv(B, tile_b),)

    const = lambda i: (0, 0)                 # weights/biases: VMEM-resident
    in_specs = [
        pl.BlockSpec((tile_b, input_dim), lambda i: (i, 0)),   # x rows (f32)
        pl.BlockSpec(w1.shape, const), pl.BlockSpec(b1.shape, const),
        pl.BlockSpec(w2.shape, const), pl.BlockSpec(b2.shape, const),
        pl.BlockSpec(w3.shape, const), pl.BlockSpec(b3.shape, const),
        pl.BlockSpec(w4.shape, const), pl.BlockSpec(b4.shape, const),
    ]
    out_specs = pl.BlockSpec((tile_b, n_pad), lambda i: (i, 0))

    d1, d2, d3 = w1.shape[1], w2.shape[1], w3.shape[1]   # 512, 256, 128
    flops = 2 * B * (input_dim * d1 + d1 * d2 + d2 * d3 + d3 * n_pad)
    bytes_accessed = (x2d.size * 4 + B * n_pad * 2
                      + 2 * (w1.size + w2.size + w3.size + w4.size)
                      + 4 * (b1.size + b2.size + b3.size + b4.size))

    out_padded = pl.pallas_call(
        mlplus_kernel,
        out_shape=jax.ShapeDtypeStruct((B, n_pad), jnp.bfloat16),
        grid_spec=pltpu.PrefetchScalarGridSpec(
            num_scalar_prefetch=0,
            grid=grid,
            in_specs=in_specs,
            out_specs=out_specs,
        ),
        compiler_params=pltpu.CompilerParams(
            dimension_semantics=("parallel",),
        ),
        cost_estimate=pl.CostEstimate(flops=flops, transcendentals=0,
                                      bytes_accessed=bytes_accessed),
    )(x2d, w1, b1, w2, b2, w3, b3, w4, b4)

    # strip class padding + upcast outside the kernel
    return out_padded[:, :num_classes].astype(jnp.float32)


def init_params(key, chans, num_classes):
    input_dim = chans * 5
    dims = [(input_dim, 512), (512, 256), (256, 128), (128, num_classes)]
    params = []
    for li, (din, dout) in enumerate(dims):
        key, kw, kb, kg, kbe, km, kv = jax.random.split(key, 7)
        bound = 1.0 / jnp.sqrt(din)
        w = jax.random.uniform(kw, (din, dout), jnp.float32, -bound, bound)
        b = jax.random.uniform(kb, (dout,), jnp.float32, -bound, bound)
        if li < 3:  # layers followed by BatchNorm1d
            gamma = 1.0 + 0.1 * jax.random.normal(kg, (dout,), jnp.float32)
            beta = 0.1 * jax.random.normal(kbe, (dout,), jnp.float32)
            mean = 0.1 * jax.random.normal(km, (dout,), jnp.float32)
            var = jnp.abs(1.0 + 0.1 * jax.random.normal(kv, (dout,), jnp.float32))
            w, b = _fold_bn(w, b, gamma, beta, mean, var)
        params.append((w, b))
    return tuple(params)


def mlplus_reference(x, params):
    """Pure-JAX f32 reference (eval-mode BN already folded into params)."""
    (w1, b1), (w2, b2), (w3, b3), (w4, b4) = params
    h = x.reshape(x.shape[0], -1)
    h = jnp.maximum(h @ w1 + b1, 0.0)
    h = jnp.maximum(h @ w2 + b2, 0.0)
    h = jnp.maximum(h @ w3 + b3, 0.0)
    return h @ w4 + b4


if __name__ == "__main__":
    chans = 62          # default from the module -> input_dim = 310
    num_classes = 4
    B = 8

    key = jax.random.PRNGKey(0)
    kp, kx = jax.random.split(key)
    params = init_params(kp, chans, num_classes)
    prepped = prepare_params(params, num_classes)   # one-time prep, off the per-call path

    # Input shaped like (B, chans, 5) EEG-band features; forward flattens it.
    x = jax.random.normal(kx, (B, chans, 5), jnp.float32)

    out = mlplus_forward(x, prepped, num_classes=num_classes)
    out = jax.block_until_ready(out)
    assert out.shape == (B, num_classes), out.shape

    # sanity check against f32 reference (loose tolerance: bf16 matmul/output)
    ref = mlplus_reference(x, params)
    err = float(jnp.max(jnp.abs(out - ref)))
    assert jnp.allclose(out, ref, atol=5e-2, rtol=5e-2), err

    print("KERNEL_OK")
</pallas_src>

<mosaic_0001>
module attributes {stable_mosaic.version = 11 : i64} {
  func.func @mlplus_kernel(%arg0: i32, %arg1: memref<8x310xf32, #tpu.memory_space<vmem>>, %arg2: memref<310x512xbf16, #tpu.memory_space<vmem>>, %arg3: memref<1x512xf32, #tpu.memory_space<vmem>>, %arg4: memref<512x256xbf16, #tpu.memory_space<vmem>>, %arg5: memref<1x256xf32, #tpu.memory_space<vmem>>, %arg6: memref<256x128xbf16, #tpu.memory_space<vmem>>, %arg7: memref<1x128xf32, #tpu.memory_space<vmem>>, %arg8: memref<128x128xbf16, #tpu.memory_space<vmem>>, %arg9: memref<1x128xf32, #tpu.memory_space<vmem>>, %arg10: memref<8x128xbf16, #tpu.memory_space<vmem>>) attributes {dimension_semantics = [#tpu.dimension_semantics<parallel>], iteration_bounds = array<i64: 1>, scalar_prefetch = 0 : i64, scratch_operands = 0 : i64, tpu.core_type = #tpu.core_type<tc>, window_params = [{transform_indices = @transform_0, window_bounds = array<i64: 8, 310>}, {pipeline_mode = #tpu.pipeline_mode<synchronous>, transform_indices = @transform_1, window_bounds = array<i64: 310, 512>}, {pipeline_mode = #tpu.pipeline_mode<synchronous>, transform_indices = @transform_2, window_bounds = array<i64: 1, 512>}, {pipeline_mode = #tpu.pipeline_mode<synchronous>, transform_indices = @transform_3, window_bounds = array<i64: 512, 256>}, {pipeline_mode = #tpu.pipeline_mode<synchronous>, transform_indices = @transform_4, window_bounds = array<i64: 1, 256>}, {pipeline_mode = #tpu.pipeline_mode<synchronous>, transform_indices = @transform_5, window_bounds = array<i64: 256, 128>}, {pipeline_mode = #tpu.pipeline_mode<synchronous>, transform_indices = @transform_6, window_bounds = array<i64: 1, 128>}, {pipeline_mode = #tpu.pipeline_mode<synchronous>, transform_indices = @transform_7, window_bounds = array<i64: 128, 128>}, {pipeline_mode = #tpu.pipeline_mode<synchronous>, transform_indices = @transform_8, window_bounds = array<i64: 1, 128>}, {transform_indices = @transform_9, window_bounds = array<i64: 8, 128>}]} {
    %c0 = arith.constant 0 : index
    %c0_0 = arith.constant 0 : index
    %0 = vector.load %arg1[%c0, %c0_0] : memref<8x310xf32, #tpu.memory_space<vmem>>, vector<8x310xf32>
    %1 = arith.truncf %0 : vector<8x310xf32> to vector<8x310xbf16>
    %c0_1 = arith.constant 0 : index
    %c0_2 = arith.constant 0 : index
    %2 = vector.load %arg2[%c0_1, %c0_2] : memref<310x512xbf16, #tpu.memory_space<vmem>>, vector<310x512xbf16>
    %cst = arith.constant dense<0.000000e+00> : vector<8x512xf32>
    %3 = tpu.matmul %1, %2, %cst {dimension_numbers = #tpu.dot_dimension_numbers<[1], [0], [0], [1], [0, 0, 1, 1], [], []>} : vector<8x310xbf16>, vector<310x512xbf16>, vector<8x512xf32> -> vector<8x512xf32>
    %c0_3 = arith.constant 0 : index
    %c0_4 = arith.constant 0 : index
    %4 = vector.load %arg3[%c0_3, %c0_4] : memref<1x512xf32, #tpu.memory_space<vmem>>, vector<1x512xf32>
    %5 = vector.broadcast %4 : vector<1x512xf32> to vector<8x512xf32>
    %6 = arith.addf %3, %5 : vector<8x512xf32>
    %cst_5 = arith.constant 0.000000e+00 : f32
    %7 = vector.broadcast %cst_5 : f32 to vector<8x512xf32>
    %8 = arith.maximumf %6, %7 : vector<8x512xf32>
    %9 = arith.truncf %8 : vector<8x512xf32> to vector<8x512xbf16>
    %c0_6 = arith.constant 0 : index
    %c0_7 = arith.constant 0 : index
    %10 = vector.load %arg4[%c0_6, %c0_7] : memref<512x256xbf16, #tpu.memory_space<vmem>>, vector<512x256xbf16>
    %cst_8 = arith.constant dense<0.000000e+00> : vector<8x256xf32>
    %11 = tpu.matmul %9, %10, %cst_8 {dimension_numbers = #tpu.dot_dimension_numbers<[1], [0], [0], [1], [0, 0, 1, 1], [], []>} : vector<8x512xbf16>, vector<512x256xbf16>, vector<8x256xf32> -> vector<8x256xf32>
    %c0_9 = arith.constant 0 : index
    %c0_10 = arith.constant 0 : index
    %12 = vector.load %arg5[%c0_9, %c0_10] : memref<1x256xf32, #tpu.memory_space<vmem>>, vector<1x256xf32>
    %13 = vector.broadcast %12 : vector<1x256xf32> to vector<8x256xf32>
    %14 = arith.addf %11, %13 : vector<8x256xf32>
    %cst_11 = arith.constant 0.000000e+00 : f32
    %15 = vector.broadcast %cst_11 : f32 to vector<8x256xf32>
    %16 = arith.maximumf %14, %15 : vector<8x256xf32>
    %17 = arith.truncf %16 : vector<8x256xf32> to vector<8x256xbf16>
    %c0_12 = arith.constant 0 : index
    %c0_13 = arith.constant 0 : index
    %18 = vector.load %arg6[%c0_12, %c0_13] : memref<256x128xbf16, #tpu.memory_space<vmem>>, vector<256x128xbf16>
    %cst_14 = arith.constant dense<0.000000e+00> : vector<8x128xf32>
    %19 = tpu.matmul %17, %18, %cst_14 {dimension_numbers = #tpu.dot_dimension_numbers<[1], [0], [0], [1], [0, 0, 1, 1], [], []>} : vector<8x256xbf16>, vector<256x128xbf16>, vector<8x128xf32> -> vector<8x128xf32>
    %c0_15 = arith.constant 0 : index
    %c0_16 = arith.constant 0 : index
    %20 = vector.load %arg7[%c0_15, %c0_16] : memref<1x128xf32, #tpu.memory_space<vmem>>, vector<1x128xf32>
    %21 = vector.broadcast %20 : vector<1x128xf32> to vector<8x128xf32>
    %22 = arith.addf %19, %21 : vector<8x128xf32>
    %cst_17 = arith.constant 0.000000e+00 : f32
    %23 = vector.broadcast %cst_17 : f32 to vector<8x128xf32>
    %24 = arith.maximumf %22, %23 : vector<8x128xf32>
    %25 = arith.truncf %24 : vector<8x128xf32> to vector<8x128xbf16>
    %c0_18 = arith.constant 0 : index
    %c0_19 = arith.constant 0 : index
    %26 = vector.load %arg8[%c0_18, %c0_19] : memref<128x128xbf16, #tpu.memory_space<vmem>>, vector<128x128xbf16>
    %cst_20 = arith.constant dense<0.000000e+00> : vector<8x128xf32>
    %27 = tpu.matmul %25, %26, %cst_20 {dimension_numbers = #tpu.dot_dimension_numbers<[1], [0], [0], [1], [0, 0, 1, 1], [], []>} : vector<8x128xbf16>, vector<128x128xbf16>, vector<8x128xf32> -> vector<8x128xf32>
    %c0_21 = arith.constant 0 : index
    %c0_22 = arith.constant 0 : index
    %28 = vector.load %arg9[%c0_21, %c0_22] : memref<1x128xf32, #tpu.memory_space<vmem>>, vector<1x128xf32>
    %29 = vector.broadcast %28 : vector<1x128xf32> to vector<8x128xf32>
    %30 = arith.addf %27, %29 : vector<8x128xf32>
    %31 = arith.truncf %30 : vector<8x128xf32> to vector<8x128xbf16>
    %c0_23 = arith.constant 0 : index
    %c0_24 = arith.constant 0 : index
    %32 = vector.load %arg10[%c0_23, %c0_24] : memref<8x128xbf16, #tpu.memory_space<vmem>>, vector<8x128xbf16>
    tpu.vector_store %arg10[%c0_23, %c0_24], %31 {strides = array<i32>} : memref<8x128xbf16, #tpu.memory_space<vmem>>, vector<8x128xbf16>,
    return
  }
  func.func @transform_0(%arg0: i32) -> (i32, i32) {
    %c0_i32 = arith.constant 0 : i32
    %c0_i32_0 = arith.constant 0 : i32
    return %arg0, %c0_i32 : i32, i32
  }
  func.func @transform_1(%arg0: i32) -> (i32, i32) {
    %c0_i32 = arith.constant 0 : i32
    %c0_i32_0 = arith.constant 0 : i32
    %c0_i32_1 = arith.constant 0 : i32
    return %c0_i32, %c0_i32_0 : i32, i32
  }
  func.func @transform_2(%arg0: i32) -> (i32, i32) {
    %c0_i32 = arith.constant 0 : i32
    %c0_i32_0 = arith.constant 0 : i32
    %c0_i32_1 = arith.constant 0 : i32
    return %c0_i32, %c0_i32_0 : i32, i32
  }
  func.func @transform_3(%arg0: i32) -> (i32, i32) {
    %c0_i32 = arith.constant 0 : i32
    %c0_i32_0 = arith.constant 0 : i32
    %c0_i32_1 = arith.constant 0 : i32
    return %c0_i32, %c0_i32_0 : i32, i32
  }
  func.func @transform_4(%arg0: i32) -> (i32, i32) {
    %c0_i32 = arith.constant 0 : i32
    %c0_i32_0 = arith.constant 0 : i32
    %c0_i32_1 = arith.constant 0 : i32
    return %c0_i32, %c0_i32_0 : i32, i32
  }
  func.func @transform_5(%arg0: i32) -> (i32, i32) {
    %c0_i32 = arith.constant 0 : i32
    %c0_i32_0 = arith.constant 0 : i32
    %c0_i32_1 = arith.constant 0 : i32
    return %c0_i32, %c0_i32_0 : i32, i32
  }
  func.func @transform_6(%arg0: i32) -> (i32, i32) {
    %c0_i32 = arith.constant 0 : i32
    %c0_i32_0 = arith.constant 0 : i32
    %c0_i32_1 = arith.constant 0 : i32
    return %c0_i32, %c0_i32_0 : i32, i32
  }
  func.func @transform_7(%arg0: i32) -> (i32, i32) {
    %c0_i32 = arith.constant 0 : i32
    %c0_i32_0 = arith.constant 0 : i32
    %c0_i32_1 = arith.constant 0 : i32
    return %c0_i32, %c0_i32_0 : i32, i32
  }
  func.func @transform_8(%arg0: i32) -> (i32, i32) {
    %c0_i32 = arith.constant 0 : i32
    %c0_i32_0 = arith.constant 0 : i32
    %c0_i32_1 = arith.constant 0 : i32
    return %c0_i32, %c0_i32_0 : i32, i32
  }
  func.func @transform_9(%arg0: i32) -> (i32, i32) {
    %c0_i32 = arith.constant 0 : i32
    %c0_i32_0 = arith.constant 0 : i32
    return %arg0, %c0_i32 : i32, i32
  }
}

</mosaic_0001>

<bundles_post_ra>
// kernel: mlplus_forward.1
= control target key start
LH: loop header
LB: loop body
LE: loop exit
PB: predicated region body
PF: predicated region fallthrough
CT: control target
= control target key end

     0   :  { %14 = vsyncpa [#allocation3], 0  ;;  %s2315_s12 = smov [#allocation2]   ;;  %s2316_s14 = smov 128   ;;  %s2969_s0 = inlined_call_operand.vmem [shape: f32[8,310], index: 0, kind: input, shape index: {}]   ;;  %s2970_s1 = inlined_call_operand.vmem [shape: bf16[310,512], index: 1, kind: input, shape index: {}]   ;;  %s2971_s2 = inlined_call_operand.vmem [shape: f32[1,512], index: 2, kind: input, shape index: {}]   ;;  %s2972_s3 = inlined_call_operand.hbm [shape: bf16[512,256], index: 3, kind: input, shape index: {}]   ;;  %s2973_s4 = inlined_call_operand.vmem [shape: f32[1,256], index: 4, kind: input, shape index: {}]   ;;  %s2974_s5 = inlined_call_operand.vmem [shape: bf16[256,128], index: 5, kind: input, shape index: {}]   ;;  %s2975_s6 = inlined_call_operand.vmem [shape: f32[1,128], index: 6, kind: input, shape index: {}]   ;;  %s2976_s7 = inlined_call_operand.vmem [shape: bf16[128,128], index: 7, kind: input, shape index: {}]   ;;  %s2977_s8 = inlined_call_operand.vmem [shape: f32[1,128], index: 8, kind: input, shape index: {}]   ;;  %s2978_s9 = inlined_call_operand.vmem [shape: bf16[8,128], index: 9, kind: output, shape index: {}]  }
   0x1   :  { %s25_s11 = sshll.u32 %s2972_s3, 4  ;;  %s27_s13 = sshll.u32 %s2315_s12, 4  ;;  %s26_s11 = int_to_ptr.hbm [resolvable:$true] %s25_s11  ;;  %s28_s13 = int_to_ptr.vmem [resolvable:$true] %s27_s13 }
   0x2   :  { %s2317_s15 = smov 8  }
   0x3   :  { %33 = dma.hbm_to_vmem [thread:$0]  %s26_s11, 8192, %s28_s13, [#allocation3], %s2316_s14, %s2316_s14, %s2317_s15  }
   0x4   :  { %2313 = dma.done.wait [#allocation3], 8192  }
   0x5   :  { %2314 = vsyncadd [#allocation3], 4294959104  ;;  %vm537_vm0 = vcmask 1042432   ;;  %v1574_v0 = vld [vmem:[%s2970_s1 + $0xe0] sm:$0xf]  ;;  %v51_v61 = vld [vmem:[%s2969_s0 + $0x10] sm:$0xff] }
   0x6   :  { %v2150_v1 = vld [vmem:[%s2970_s1 + $0xec] sm:$0xf0]  ;;  %v2148_v2 = vld [vmem:[%s2970_s1 + $0xe4] sm:$0xf]  ;;  %v1576_v4 = vld [vmem:[%s2970_s1 + $0xf0] sm:$0xf0] }
   0x7   :  { %v1575_v3 = vor.u32 %v2150_v1, %v1574_v0  ;;  %v1702_v5 = vld [vmem:[%s2970_s1 + $0x1e0] sm:$0xf]  ;;  %v2182_v6 = vld [vmem:[%s2970_s1 + $0x1ec] sm:$0xf0]  ;;  %v1579_v7 = vor.u32 %v2148_v2, %v1576_v4  ;;  %v2144_v14 = vld [vmem:[%s2970_s1 + $0xc4] sm:$0xf] }
   0x8   :  { %v1703_v8 = vor.u32 %v2182_v6, %v1702_v5  ;;  %v2392_v9 = vld [vmem:[%s2970_s1 + $0x260] sm:$0x77]  ;;  %v2146_v11 = vld [vmem:[%s2970_s1 + $0xcc] sm:$0xf0]  ;;  %v1560_v15 = vld [vmem:[%s2970_s1 + $0xd0] sm:$0xf0] }
   0x9   :  { %v1558_v10 = vld [vmem:[%s2970_s1 + $0xc0] sm:$0xf]  ;;  %550 = vmatpush.bf16.msra.mxu0 %v1575_v3  ;;  %v373_v12 = vunpack.c.l.b16 %v2392_v9  ;;  %589 = vmatpush.bf16.msra.mxu3 %v1579_v7  ;;  %v1563_v17 = vor.u32 %v2144_v14, %v1560_v15  ;;  %v2178_v18 = vld [vmem:[%s2970_s1 + $0x1cc] sm:$0xf0]  ;;  %v2140_v25 = vld [vmem:[%s2970_s1 + $0xa4] sm:$0xf]  ;;  %v2519_v7 = vpack.c.bf16 %v51_v61, %v51_v61 }
   0xa   :  { %v1559_v13 = vor.u32 %v2146_v11, %v1558_v10  ;;  %v1686_v16 = vld [vmem:[%s2970_s1 + $0x1c0] sm:$0xf]  ;;  %563 = vmatpush.bf16.msra.mxu1 %v1703_v8  ;;  %v2194_v20 = vld [vmem:[%s2970_s1 + $0x24c] sm:$0xf0]  ;;  %v1544_v26 = vld [vmem:[%s2970_s1 + $0xb0] sm:$0xf0] }
   0xb   :  { %v1750_v19 = vld [vmem:[%s2970_s1 + $0x240] sm:$0xf]  ;;  %v453_v21 = vpack.c.b16 %v373_v12, %v373_v12  ;;  %v1687_v22 = vor.u32 %v2178_v18, %v1686_v16  ;;  %v2142_v24 = vld [vmem:[%s2970_s1 + $0xac] sm:$0xf0]  ;;  %v1547_v32 = vor.u32 %v2140_v25, %v1544_v26  ;;  %v2136_v38 = vld [vmem:[%s2970_s1 + $0x84] sm:$0xf] }
   0xc   :  { %v1542_v23 = vld [vmem:[%s2970_s1 + $0xa0] sm:$0xf]  ;;  %v2174_v28 = vld [vmem:[%s2970_s1 + $0x1ac] sm:$0xf0]  ;;  %v1751_v31 = vor.u32 %v2194_v20, %v1750_v19  ;;  %v1528_v39 = vld [vmem:[%s2970_s1 + $0x90] sm:$0xf0] }
   0xd   :  { %v1670_v27 = vld [vmem:[%s2970_s1 + $0x1a0] sm:$0xf]  ;;  %v539_v29 = vsel %vm537_vm0, %v453_v21, 0  ;;  %551 = vmatpush.bf16.msra.mxu0 %v1559_v13  ;;  %v1543_v30 = vor.u32 %v2142_v24, %v1542_v23  ;;  %590 = vmatpush.bf16.msra.mxu3 %v1563_v17  ;;  %v2138_v35 = vld [vmem:[%s2970_s1 + $0x8c] sm:$0xf0]  ;;  %v1531_v45 = vor.u32 %v2136_v38, %v1528_v39  ;;  %vm533_vm1 = vcmask 441344  }
   0xe   :  { %580 = vmatpush.bf16.msra.mxu2 %v539_v29  ;;  %v1734_v33 = vld [vmem:[%s2970_s1 + $0x220] sm:$0xf]  ;;  %564 = vmatpush.bf16.msra.mxu1 %v1687_v22  ;;  %v1671_v36 = vor.u32 %v2174_v28, %v1670_v27  ;;  %v2190_v37 = vld [vmem:[%s2970_s1 + $0x22c] sm:$0xf0]  ;;  %v2132_v50 = vld [vmem:[%s2970_s1 + $0x64] sm:$0xf]  ;;  %v374_v17 = vunpack.c.h.b16 %v2392_v9 }
   0xf   :  { %v1526_v34 = vld [vmem:[%s2970_s1 + $0x80] sm:$0xf]  ;;  %v2170_v41 = vld [vmem:[%s2970_s1 + $0x18c] sm:$0xf0]  ;;  %v1735_v44 = vor.u32 %v2190_v37, %v1734_v33  ;;  %v1512_v51 = vld [vmem:[%s2970_s1 + $0x70] sm:$0xf0] }
  0x10   :  { %v1654_v40 = vld [vmem:[%s2970_s1 + $0x180] sm:$0xf]  ;;  %v1527_v42 = vor.u32 %v2138_v35, %v1526_v34  ;;  %v2186_v46 = vld [vmem:[%s2970_s1 + $0x20c] sm:$0xf0]  ;;  %v2180_v52 = vld [vmem:[%s2970_s1 + $0x1e4] sm:$0xf]  ;;  %v1515_v58 = vor.u32 %v2132_v50, %v1512_v51  ;;  %v454_v29 = vpack.c.b16 %v374_v17, %v374_v17 }
  0x11   :  { %552 = vmatpush.bf16.msra.mxu0 %v1543_v30  ;;  %v1718_v43 = vld [vmem:[%s2970_s1 + $0x200] sm:$0xf]  ;;  %591 = vmatpush.bf16.msra.mxu3 %v1547_v32  ;;  %v2134_v48 = vld [vmem:[%s2970_s1 + $0x6c] sm:$0xf0]  ;;  %v1655_v49 = vor.u32 %v2170_v41, %v1654_v40  ;;  %v1704_v53 = vld [vmem:[%s2970_s1 + $0x1f0] sm:$0xf0] }
  0x12   :  { %581 = vmatpush.bf16.msra.mxu2 %v1751_v31  ;;  %v1510_v47 = vld [vmem:[%s2970_s1 + $0x60] sm:$0xf]  ;;  %565 = vmatpush.bf16.msra.mxu1 %v1671_v36  ;;  %v2166_v55 = vld [vmem:[%s2970_s1 + $0x16c] sm:$0xf0]  ;;  %v1719_v57 = vor.u32 %v2186_v46, %v1718_v43  ;;  %v1707_v62 = vor.u32 %v2180_v52, %v1704_v53  ;;  %v2128_v0 = vld [vmem:[%s2970_s1 + $0x44] sm:$0xf] }
  0x13   :  { %v1638_v54 = vld [vmem:[%s2970_s1 + $0x160] sm:$0xf]  ;;  %v1511_v56 = vor.u32 %v2134_v48, %v1510_v47  ;;  %v2130_v60 = vld [vmem:[%s2970_s1 + $0x4c] sm:$0xf0]  ;;  %v1496_v1 = vld [vmem:[%s2970_s1 + $0x50] sm:$0xf0] }
  0x14   :  { %v1494_v59 = vld [vmem:[%s2970_s1 + $0x40] sm:$0xf]  ;;  %v1639_v63 = vor.u32 %v2166_v55, %v1638_v54  ;;  %v2176_v2 = vld [vmem:[%s2970_s1 + $0x1c4] sm:$0xf]  ;;  %v1688_v3 = vld [vmem:[%s2970_s1 + $0x1d0] sm:$0xf0]  ;;  %v1499_v8 = vor.u32 %v2128_v0, %v1496_v1 }
  0x15   :  { %553 = vmatpush.bf16.msra.mxu0 %v1527_v42  ;;  %592 = vmatpush.bf16.msra.mxu3 %v1531_v45  ;;  %v1622_v4 = vld [vmem:[%s2970_s1 + $0x140] sm:$0xf]  ;;  %v2162_v5 = vld [vmem:[%s2970_s1 + $0x14c] sm:$0xf0]  ;;  %v1495_v6 = vor.u32 %v2130_v60, %v1494_v59  ;;  %v1691_v12 = vor.u32 %v2176_v2, %v1688_v3  ;;  %v2124_v14 = vld [vmem:[%s2970_s1 + $0x24] sm:$0xf] }
  0x16   :  { %582 = vmatpush.bf16.msra.mxu2 %v1735_v44  ;;  %566 = vmatpush.bf16.msra.mxu1 %v1655_v49  ;;  %v1478_v10 = vld [vmem:[%s2970_s1 + $0x20] sm:$0xf]  ;;  %v2126_v11 = vld [vmem:[%s2970_s1 + $0x2c] sm:$0xf0]  ;;  %v1623_v13 = vor.u32 %v2162_v5, %v1622_v4  ;;  %v1480_v15 = vld [vmem:[%s2970_s1 + $0x30] sm:$0xf0] }
  0x17   :  { %v2172_v16 = vld [vmem:[%s2970_s1 + $0x1a4] sm:$0xf]  ;;  %v1672_v18 = vld [vmem:[%s2970_s1 + $0x1b0] sm:$0xf0]  ;;  %v1606_v19 = vld [vmem:[%s2970_s1 + $0x120] sm:$0xf]  ;;  %v1479_v21 = vor.u32 %v2126_v11, %v1478_v10  ;;  %v1483_v22 = vor.u32 %v2124_v14, %v1480_v15 }
  0x18   :  { %v2158_v20 = vld [vmem:[%s2970_s1 + $0x12c] sm:$0xf0]  ;;  %v1462_v9 = vld [vmem:[%s2970_s1] sm:$0xf]  ;;  %v1675_v24 = vor.u32 %v2172_v16, %v1672_v18  ;;  %v2120_v26 = vld [vmem:[%s2970_s1 + $0x4] sm:$0xf] }
  0x19   :  { %554 = vmatpush.bf16.msra.mxu0 %v1511_v56  ;;  %593 = vmatpush.bf16.msra.mxu3 %v1515_v58  ;;  %v2122_v23 = vld [vmem:[%s2970_s1 + $0xc] sm:$0xf0]  ;;  %v1607_v25 = vor.u32 %v2158_v20, %v1606_v19  ;;  %v1464_v27 = vld [vmem:[%s2970_s1 + $0x10] sm:$0xf0]  ;;  %v2168_v28 = vld [vmem:[%s2970_s1 + $0x184] sm:$0xf] }
  0x1a   :  { %583 = vmatpush.bf16.msra.mxu2 %v1719_v57  ;;  %567 = vmatpush.bf16.msra.mxu1 %v1639_v63  ;;  %v1656_v30 = vld [vmem:[%s2970_s1 + $0x190] sm:$0xf0]  ;;  %v1710_v31 = vld [vmem:[%s2970_s1 + $0x1e8] sm:$0xf]  ;;  %v2183_v32 = vld [vmem:[%s2970_s1 + $0x1f4] sm:$0xf0]  ;;  %v1463_v33 = vor.u32 %v2122_v23, %v1462_v9  ;;  %v1467_v37 = vor.u32 %v2120_v26, %v1464_v27 }
  0x1b   :  { %v1590_v34 = vld [vmem:[%s2970_s1 + $0x100] sm:$0xf]  ;;  %v2154_v35 = vld [vmem:[%s2970_s1 + $0x10c] sm:$0xf0]  ;;  %v1582_v38 = vld [vmem:[%s2970_s1 + $0xe8] sm:$0xf]  ;;  %v1659_v40 = vor.u32 %v2168_v28, %v1656_v30  ;;  %v1711_v42 = vor.u32 %v2183_v32, %v1710_v31 }
  0x1c   :  { %v49_v36 = vld [vmem:[%s2969_s0] sm:$0xff]  ;;  %v2151_v39 = vld [vmem:[%s2970_s1 + $0xf4] sm:$0xf0]  ;;  %v542_v41 = vsel %vm537_vm0, %v454_v29, 0  ;;  %v1752_v44 = vld [vmem:[%s2970_s1 + $0x250] sm:$0xf0]  ;;  %v1591_v45 = vor.u32 %v2154_v35, %v1590_v34 }
  0x1d   :  { %555 = vmatpush.bf16.msra.mxu0 %v1495_v6  ;;  %1764 = vmatmul.msk.bf16.vlgmr.msra.gmra.mxu2 %vm533_vm1, %v2519_v7  ;;  %v2192_v43 = vld [vmem:[%s2970_s1 + $0x244] sm:$0xf]  ;;  %v2594_v46 = vpack.c.bf16 %v49_v36, %v49_v36  ;;  %v1640_v48 = vld [vmem:[%s2970_s1 + $0x170] sm:$0xf0]  ;;  %v50_v49 = vld [vmem:[%s2969_s0 + $0x8] sm:$0xff]  ;;  %v1583_v50 = vor.u32 %v2151_v39, %v1582_v38 }
  0x1e   :  { %602 = vmatpush.bf16.msrb.mxu2 %v1707_v62  ;;  %594 = vmatpush.bf16.msra.mxu3 %v1499_v8  ;;  %v2164_v47 = vld [vmem:[%s2970_s1 + $0x164] sm:$0xf]  ;;  %v1694_v51 = vld [vmem:[%s2970_s1 + $0x1c8] sm:$0xf]  ;;  %v2179_v52 = vld [vmem:[%s2970_s1 + $0x1d4] sm:$0xf0]  ;;  %v1755_v54 = vor.u32 %v2192_v43, %v1752_v44  ;;  %v2622_v58 = vpack.c.bf16 %v50_v49, %v50_v49 }
  0x1f   :  { %568 = vmatpush.bf16.msra.mxu1 %v1623_v13  ;;  %v2614_v53 = vld [vmem:[%s2970_s1 + $0x268] sm:$0x77]  ;;  %v2147_v56 = vld [vmem:[%s2970_s1 + $0xd4] sm:$0xf0]  ;;  %v1643_v57 = vor.u32 %v2164_v47, %v1640_v48  ;;  %v2188_v59 = vld [vmem:[%s2970_s1 + $0x224] sm:$0xf]  ;;  %v1695_v61 = vor.u32 %v2179_v52, %v1694_v51 }
  0x20   :  { %v1566_v55 = vld [vmem:[%s2970_s1 + $0xc8] sm:$0xf]  ;;  %v1736_v60 = vld [vmem:[%s2970_s1 + $0x230] sm:$0xf0]  ;;  %v2160_v62 = vld [vmem:[%s2970_s1 + $0x144] sm:$0xf]  ;;  %v375_v0 = vunpack.c.l.b16 %v2614_v53 }
  0x21   :  { %556 = vmatpush.bf16.msra.mxu0 %v1479_v21  ;;  %v1624_v63 = vld [vmem:[%s2970_s1 + $0x150] sm:$0xf0]  ;;  %v1567_v1 = vor.u32 %v2147_v56, %v1566_v55  ;;  %v1678_v2 = vld [vmem:[%s2970_s1 + $0x1a8] sm:$0xf]  ;;  %v2175_v3 = vld [vmem:[%s2970_s1 + $0x1b4] sm:$0xf0]  ;;  %v1739_v4 = vor.u32 %v2188_v59, %v1736_v60 }
  0x22   :  { %603 = vmatpush.bf16.msrb.mxu2 %v1691_v12  ;;  %595 = vmatpush.bf16.msra.mxu3 %v1483_v22  ;;  %v1550_v5 = vld [vmem:[%s2970_s1 + $0xa8] sm:$0xf]  ;;  %v2143_v6 = vld [vmem:[%s2970_s1 + $0xb4] sm:$0xf0]  ;;  %v1627_v8 = vor.u32 %v2160_v62, %v1624_v63  ;;  %v2184_v10 = vld [vmem:[%s2970_s1 + $0x204] sm:$0xf]  ;;  %v1679_v12 = vor.u32 %v2175_v3, %v1678_v2  ;;  %v455_v15 = vpack.c.b16 %v375_v0, %v375_v0  ;;  %v376_v2 = vunpack.c.h.b16 %v2614_v53 }
  0x23   :  { %569 = vmatpush.bf16.msra.mxu1 %v1607_v25  ;;  %v1720_v11 = vld [vmem:[%s2970_s1 + $0x210] sm:$0xf0]  ;;  %v2156_v13 = vld [vmem:[%s2970_s1 + $0x124] sm:$0xf]  ;;  %v1551_v16 = vor.u32 %v2143_v6, %v1550_v5  ;;  %v1662_v17 = vld [vmem:[%s2970_s1 + $0x188] sm:$0xf] }
  0x24   :  { %v1608_v14 = vld [vmem:[%s2970_s1 + $0x130] sm:$0xf0]  ;;  %v2171_v18 = vld [vmem:[%s2970_s1 + $0x194] sm:$0xf0]  ;;  %v1723_v19 = vor.u32 %v2184_v10, %v1720_v11  ;;  %v1534_v20 = vld [vmem:[%s2970_s1 + $0x88] sm:$0xf] }
  0x25   :  { %557 = vmatpush.bf16.msra.mxu0 %v1463_v33  ;;  %v2139_v21 = vld [vmem:[%s2970_s1 + $0x94] sm:$0xf0]  ;;  %v1611_v22 = vor.u32 %v2156_v13, %v1608_v14  ;;  %v2152_v9 = vld [vmem:[%s2970_s1 + $0x104] sm:$0xf]  ;;  %v1592_v23 = vld [vmem:[%s2970_s1 + $0x110] sm:$0xf0]  ;;  %v1663_v25 = vor.u32 %v2171_v18, %v1662_v17 }
  0x26   :  { %604 = vmatpush.bf16.msrb.mxu2 %v1675_v24  ;;  %596 = vmatpush.bf16.msra.mxu3 %v1467_v37  ;;  %v1646_v24 = vld [vmem:[%s2970_s1 + $0x168] sm:$0xf]  ;;  %v545_v26 = vsel %vm537_vm0, %v455_v15, 0  ;;  %v2195_v28 = vld [vmem:[%s2970_s1 + $0x254] sm:$0xf0]  ;;  %v1535_v29 = vor.u32 %v2139_v21, %v1534_v20  ;;  %v1595_v35 = vor.u32 %v2152_v9, %v1592_v23 }
  0x27   :  { %570 = vmatpush.bf16.msra.mxu1 %v1591_v45  ;;  %v1758_v27 = vld [vmem:[%s2970_s1 + $0x248] sm:$0xf]  ;;  %v2167_v30 = vld [vmem:[%s2970_s1 + $0x174] sm:$0xf0]  ;;  %v2149_v31 = vld [vmem:[%s2970_s1 + $0xec] sm:$0xf] }
  0x28   :  { %558 = vmatmul.bf16.vlgmr.msra.gmra.mxu0 %v2594_v46  ;;  %v1584_v32 = vld [vmem:[%s2970_s1 + $0xf8] sm:$0xf0]  ;;  %v1518_v33 = vld [vmem:[%s2970_s1 + $0x68] sm:$0xf]  ;;  %v2135_v34 = vld [vmem:[%s2970_s1 + $0x74] sm:$0xf0]  ;;  %v1759_v36 = vor.u32 %v2195_v28, %v1758_v27  ;;  %v1647_v37 = vor.u32 %v2167_v30, %v1646_v24 }
  0x29   :  { %619 = vmatpush.bf16.msrb.mxu0 %v542_v41  ;;  %597 = vmatmul.bf16.vlgmr.msra.gmra.mxu3 %v2594_v46  ;;  %v1587_v38 = vor.u32 %v2149_v31, %v1584_v32  ;;  %v1630_v39 = vld [vmem:[%s2970_s1 + $0x148] sm:$0xf]  ;;  %v2191_v41 = vld [vmem:[%s2970_s1 + $0x234] sm:$0xf0]  ;;  %v2145_v44 = vld [vmem:[%s2970_s1 + $0xcc] sm:$0xf] }
  0x2a   :  { %605 = vmatpush.bf16.msrb.mxu2 %v1659_v40  ;;  %641 = vmatpush.bf16.msrb.mxu3 %v1711_v42  ;;  %v1742_v40 = vld [vmem:[%s2970_s1 + $0x228] sm:$0xf]  ;;  %v1519_v42 = vor.u32 %v2135_v34, %v1518_v33  ;;  %v2163_v43 = vld [vmem:[%s2970_s1 + $0x154] sm:$0xf0]  ;;  %v1568_v45 = vld [vmem:[%s2970_s1 + $0xd8] sm:$0xf0] }
  0x2b   :  { %628 = vmatpush.bf16.msrb.mxu1 %v1583_v50  ;;  %v1502_v47 = vld [vmem:[%s2970_s1 + $0x48] sm:$0xf]  ;;  %v2131_v48 = vld [vmem:[%s2970_s1 + $0x54] sm:$0xf0]  ;;  %v1743_v49 = vor.u32 %v2191_v41, %v1742_v40  ;;  %v1631_v51 = vor.u32 %v2163_v43, %v1630_v39  ;;  %v1571_v52 = vor.u32 %v2145_v44, %v1568_v45  ;;  %v2141_v59 = vld [vmem:[%s2970_s1 + $0xac] sm:$0xf] }
  0x2c   :  { %571 = vmatmul.bf16.vlgmr.msra.gmra.mxu1 %v2622_v58  ;;  %v1614_v50 = vld [vmem:[%s2970_s1 + $0x128] sm:$0xf]  ;;  %v2187_v56 = vld [vmem:[%s2970_s1 + $0x214] sm:$0xf0]  ;;  %v1552_v60 = vld [vmem:[%s2970_s1 + $0xb8] sm:$0xf0] }
  0x2d   :  { %620 = vmatpush.bf16.msrb.mxu0 %v1755_v54  ;;  %v2159_v54 = vld [vmem:[%s2970_s1 + $0x134] sm:$0xf0]  ;;  %v1726_v55 = vld [vmem:[%s2970_s1 + $0x208] sm:$0xf]  ;;  %v1712_v62 = vld [vmem:[%s2970_s1 + $0x1f8] sm:$0xf0] }
  0x2e   :  { %606 = vmatpush.bf16.msrb.mxu2 %v1643_v57  ;;  %642 = vmatpush.bf16.msrb.mxu3 %v1695_v61  ;;  %v1503_v57 = vor.u32 %v2131_v48, %v1502_v47  ;;  %v2181_v61 = vld [vmem:[%s2970_s1 + $0x1ec] sm:$0xf]  ;;  %v1486_v63 = vld [vmem:[%s2970_s1 + $0x28] sm:$0xf]  ;;  %v2127_v0 = vld [vmem:[%s2970_s1 + $0x34] sm:$0xf0]  ;;  %v1615_v3 = vor.u32 %v2159_v54, %v1614_v50 }
  0x2f   :  { %629 = vmatpush.bf16.msrb.mxu1 %v1567_v1  ;;  %v1727_v1 = vor.u32 %v2187_v56, %v1726_v55  ;;  %v1598_v5 = vld [vmem:[%s2970_s1 + $0x108] sm:$0xf]  ;;  %v2155_v6 = vld [vmem:[%s2970_s1 + $0x114] sm:$0xf0]  ;;  %v1487_v10 = vor.u32 %v2127_v0, %v1486_v63  ;;  %v2137_v11 = vld [vmem:[%s2970_s1 + $0x8c] sm:$0xf] }
  0x30   :  { %v1536_v53 = vld [vmem:[%s2970_s1 + $0x98] sm:$0xf0]  ;;  %v1470_v14 = vld [vmem:[%s2970_s1 + $0x8] sm:$0xf]  ;;  %v2123_v15 = vld [vmem:[%s2970_s1 + $0x14] sm:$0xf0]  ;;  %v1599_v17 = vor.u32 %v2155_v6, %v1598_v5 }
  0x31   :  { %621 = vmatpush.bf16.msrb.mxu0 %v1739_v4  ;;  %v1555_v4 = vor.u32 %v2141_v59, %v1552_v60  ;;  %v1696_v13 = vld [vmem:[%s2970_s1 + $0x1d8] sm:$0xf0]  ;;  %v1539_v18 = vor.u32 %v2137_v11, %v1536_v53  ;;  %v1471_v21 = vor.u32 %v2123_v15, %v1470_v14  ;;  %v1826_v9 = vld [vmem:[#allocation2 + $0x70] sm:$0xf]  ;;  %v2211_v23 = vld [vmem:[#allocation2 + $0x74] sm:$0xf0] }
  0x32   :  { %607 = vmatpush.bf16.msrb.mxu2 %v1627_v8  ;;  %643 = vmatpush.bf16.msrb.mxu3 %v1679_v12  ;;  %v1715_v8 = vor.u32 %v2181_v61, %v1712_v62  ;;  %v2177_v12 = vld [vmem:[%s2970_s1 + $0x1cc] sm:$0xf]  ;;  %v1818_v31 = vld [vmem:[#allocation2 + $0x60] sm:$0xf]  ;;  %v2209_v32 = vld [vmem:[#allocation2 + $0x64] sm:$0xf0] }
  0x33   :  { %630 = vmatpush.bf16.msrb.mxu1 %v1551_v16  ;;  %v456_v16 = vpack.c.b16 %v376_v2, %v376_v2  ;;  %v1699_v20 = vor.u32 %v2177_v12, %v1696_v13  ;;  %v2173_v24 = vld [vmem:[%s2970_s1 + $0x1ac] sm:$0xf]  ;;  %v1504_v34 = vld [vmem:[%s2970_s1 + $0x58] sm:$0xf0]  ;;  %v1819_v41 = vor.u32 %v2209_v32, %v1818_v31  ;;  %v1810_v43 = vld [vmem:[#allocation2 + $0x50] sm:$0xf] }
  0x34   :  { %v2193_v28 = vld [vmem:[%s2970_s1 + $0x24c] sm:$0xf]  ;;  %v1744_v40 = vld [vmem:[%s2970_s1 + $0x238] sm:$0xf0]  ;;  %v2207_v44 = vld [vmem:[#allocation2 + $0x54] sm:$0xf0] }
  0x35   :  { %622 = vmatpush.bf16.msrb.mxu0 %v1723_v19  ;;  %v2133_v19 = vld [vmem:[%s2970_s1 + $0x6c] sm:$0xf]  ;;  %v548_v27 = vsel %vm537_vm0, %v456_v16, 0  ;;  %v1488_v47 = vld [vmem:[%s2970_s1 + $0x38] sm:$0xf0]  ;;  %v1811_v55 = vor.u32 %v2207_v44, %v1810_v43 }
  0x36   :  { %608 = vmatpush.bf16.msrb.mxu2 %v1611_v22  ;;  %644 = vmatpush.bf16.msrb.mxu3 %v1663_v25  ;;  %v1520_v22 = vld [vmem:[%s2970_s1 + $0x78] sm:$0xf0]  ;;  %v2129_v33 = vld [vmem:[%s2970_s1 + $0x4c] sm:$0xf]  ;;  %v1802_v56 = vld [vmem:[#allocation2 + $0x40] sm:$0xf] }
  0x37   :  { %631 = vmatpush.bf16.msrb.mxu1 %v1535_v29  ;;  %v1680_v25 = vld [vmem:[%s2970_s1 + $0x1b8] sm:$0xf0]  ;;  %v1523_v30 = vor.u32 %v2133_v19, %v1520_v22  ;;  %v2189_v39 = vld [vmem:[%s2970_s1 + $0x22c] sm:$0xf]  ;;  %v2205_v59 = vld [vmem:[#allocation2 + $0x44] sm:$0xf0] }
  0x38   :  { %1765 = vmatmul.msk.bf16.vlgmr.msrb.gmra.mxu0 %vm533_vm1, %v2519_v7  ;;  %v1760_v29 = vld [vmem:[%s2970_s1 + $0x258] sm:$0xf0]  ;;  %v2125_v45 = vld [vmem:[%s2970_s1 + $0x2c] sm:$0xf]  ;;  %v1890_v60 = vld [vmem:[#allocation2 + $0xf0] sm:$0xf] }
  0x39   :  { %658 = vmatpush.bf16.msra.mxu0 %v545_v26  ;;  %v1827_v26 = vor.u32 %v2211_v23, %v1826_v9  ;;  %v1648_v50 = vld [vmem:[%s2970_s1 + $0x178] sm:$0xf0]  ;;  %v2227_v61 = vld [vmem:[#allocation2 + $0xf4] sm:$0xf0]  ;;  %v2121_v62 = vld [vmem:[%s2970_s1 + $0xc] sm:$0xf] }
  0x3a   :  { %609 = vmatpush.bf16.msrb.mxu2 %v1595_v35  ;;  %645 = vmatpush.bf16.msrb.mxu3 %v1647_v37  ;;  %v1683_v35 = vor.u32 %v2173_v24, %v1680_v25  ;;  %v1763_v37 = vor.u32 %v2193_v28, %v1760_v29  ;;  %v1728_v54 = vld [vmem:[%s2970_s1 + $0x218] sm:$0xf0]  ;;  %v2161_v2 = vld [vmem:[%s2970_s1 + $0x14c] sm:$0xf]  ;;  %v1891_v5 = vor.u32 %v2227_v61, %v1890_v60  ;;  %v1882_v53 = vld [vmem:[#allocation2 + $0xe0] sm:$0xf] }
  0x3b   :  { %632 = vmatpush.bf16.msrb.mxu1 %v1519_v42  ;;  %v1507_v42 = vor.u32 %v2129_v33, %v1504_v34  ;;  %v1472_v63 = vld [vmem:[%s2970_s1 + $0x18] sm:$0xf0]  ;;  %v2225_v12 = vld [vmem:[#allocation2 + $0xe4] sm:$0xf0]  ;;  %v2157_v13 = vld [vmem:[%s2970_s1 + $0x12c] sm:$0xf] }
  0x3c   :  { %v1475_v6 = vor.u32 %v2121_v62, %v1472_v63  ;;  %v1616_v14 = vld [vmem:[%s2970_s1 + $0x138] sm:$0xf0]  ;;  %v1786_v16 = vld [vmem:[#allocation2 + $0x20] sm:$0xf]  ;;  %v2153_v22 = vld [vmem:[%s2970_s1 + $0x10c] sm:$0xf] }
  0x3d   :  { %659 = vmatpush.bf16.msra.mxu0 %v1759_v36  ;;  %610 = vmatmul.bf16.vlgmr.msrb.gmra.mxu2 %v2622_v58  ;;  %v2169_v36 = vld [vmem:[%s2970_s1 + $0x18c] sm:$0xf]  ;;  %v1619_v19 = vor.u32 %v2157_v13, %v1616_v14  ;;  %v1600_v9 = vld [vmem:[%s2970_s1 + $0x118] sm:$0xf0]  ;;  %v1778_v24 = vld [vmem:[#allocation2 + $0x10] sm:$0xf] }
  0x3e   :  { %667 = vmatpush.bf16.msra.mxu2 %v1587_v38  ;;  %646 = vmatpush.bf16.msrb.mxu3 %v1631_v51  ;;  %v1664_v38 = vld [vmem:[%s2970_s1 + $0x198] sm:$0xf0]  ;;  %v1747_v51 = vor.u32 %v2189_v39, %v1744_v40  ;;  %v2199_v25 = vld [vmem:[#allocation2 + $0x14] sm:$0xf0]  ;;  %v2221_v28 = vld [vmem:[#allocation2 + $0xc4] sm:$0xf0] }
  0x3f   :  { %633 = vmatpush.bf16.msrb.mxu1 %v1503_v57  ;;  %v1667_v48 = vor.u32 %v2169_v36, %v1664_v38  ;;  %v1491_v57 = vor.u32 %v2125_v45, %v1488_v47  ;;  %v1779_v29 = vor.u32 %v2199_v25, %v1778_v24  ;;  %v2197_v31 = vld [vmem:[#allocation2 + $0x4] sm:$0xf0]  ;;  %v2210_v32 = vld [vmem:[#allocation2 + $0x74] sm:$0xf]  ;;  %v1828_v33 = vld [vmem:[#allocation2 + $0x78] sm:$0xf0] }
  0x40   :  { %v1954_v36 = vld [vmem:[#allocation2 + $0x170] sm:$0xf]  ;;  %v2208_v38 = vld [vmem:[#allocation2 + $0x64] sm:$0xf]  ;;  %v1820_v40 = vld [vmem:[#allocation2 + $0x68] sm:$0xf0] }
  0x41   :  { %660 = vmatpush.bf16.msra.mxu0 %v1743_v49  ;;  %v2165_v49 = vld [vmem:[%s2970_s1 + $0x16c] sm:$0xf]  ;;  %v2219_v43 = vld [vmem:[#allocation2 + $0xb4] sm:$0xf0]  ;;  %v1946_v45 = vld [vmem:[#allocation2 + $0x160] sm:$0xf] }
  0x42   :  { %668 = vmatpush.bf16.msra.mxu2 %v1571_v52  ;;  %647 = vmatpush.bf16.msrb.mxu3 %v1615_v3  ;;  %v2185_v52 = vld [vmem:[%s2970_s1 + $0x20c] sm:$0xf]  ;;  %v1651_v0 = vor.u32 %v2165_v49, %v1648_v50  ;;  %v1632_v3 = vld [vmem:[%s2970_s1 + $0x158] sm:$0xf0]  ;;  %v2241_v47 = vld [vmem:[#allocation2 + $0x164] sm:$0xf0] }
  0x43   :  { %634 = vmatpush.bf16.msrb.mxu1 %v1487_v10  ;;  %v2203_v10 = vld [vmem:[#allocation2 + $0x34] sm:$0xf0]  ;;  %v1635_v11 = vor.u32 %v2161_v2, %v1632_v3  ;;  %v1947_v49 = vor.u32 %v2241_v47, %v1946_v45  ;;  %v1812_v50 = vld [vmem:[#allocation2 + $0x58] sm:$0xf0]  ;;  %v1804_v60 = vld [vmem:[#allocation2 + $0x48] sm:$0xf0] }
  0x44   :  { %v1842_v62 = vld [vmem:[#allocation2 + $0x90] sm:$0xf]  ;;  %v2215_v63 = vld [vmem:[#allocation2 + $0x94] sm:$0xf0]  ;;  %v2237_v2 = vld [vmem:[#allocation2 + $0x144] sm:$0xf0] }
  0x45   :  { %661 = vmatpush.bf16.msra.mxu0 %v1727_v1  ;;  %v1731_v1 = vor.u32 %v2185_v52, %v1728_v54  ;;  %v2217_v52 = vld [vmem:[#allocation2 + $0xa4] sm:$0xf0]  ;;  %v2202_v3 = vld [vmem:[#allocation2 + $0x34] sm:$0xf]  ;;  %v2200_v13 = vld [vmem:[#allocation2 + $0x24] sm:$0xf] }
  0x46   :  { %669 = vmatpush.bf16.msra.mxu2 %v1555_v4  ;;  %648 = vmatpush.bf16.msrb.mxu3 %v1599_v17  ;;  %v1803_v4 = vor.u32 %v2205_v59, %v1802_v56  ;;  %v2201_v17 = vld [vmem:[#allocation2 + $0x24] sm:$0xf0]  ;;  %v2239_v56 = vld [vmem:[#allocation2 + $0x154] sm:$0xf0]  ;;  %v2198_v24 = vld [vmem:[#allocation2 + $0x14] sm:$0xf] }
  0x47   :  { %635 = vmatpush.bf16.msrb.mxu1 %v1471_v21  ;;  %v2223_v21 = vld [vmem:[#allocation2 + $0xd4] sm:$0xf0]  ;;  %v1787_v23 = vor.u32 %v2201_v17, %v1786_v16  ;;  %v2226_v16 = vld [vmem:[#allocation2 + $0xf4] sm:$0xf]  ;;  %v1892_v17 = vld [vmem:[#allocation2 + $0xf8] sm:$0xf0] }
  0x48   :  { %1766 = vmatmul.msk.bf16.vlgmr.msra.gmra.mxu0 %vm533_vm1, %v2519_v7  ;;  %v2002_v45 = vld [vmem:[#allocation2 + $0x1d0] sm:$0xf] }
  0x49   :  { %680 = vmatpush.bf16.msrb.mxu0 %v1715_v8  ;;  %649 = vmatmul.bf16.vlgmr.msrb.gmra.mxu3 %v2622_v58  ;;  %v1794_v8 = vld [vmem:[#allocation2 + $0x30] sm:$0xf] }
  0x4a   :  { %670 = vmatpush.bf16.msra.mxu2 %v1539_v18  ;;  %1104 = vmatpush.bf16.msra.mxu3 %v1827_v26  ;;  %v1795_v15 = vor.u32 %v2203_v10, %v1794_v8  ;;  %v1883_v18 = vor.u32 %v2225_v12, %v1882_v53  ;;  %v2213_v8 = vld [vmem:[#allocation2 + $0x84] sm:$0xf0]  ;;  %v1922_v53 = vld [vmem:[#allocation2 + $0x130] sm:$0xf]  ;;  %v2235_v12 = vld [vmem:[#allocation2 + $0x134] sm:$0xf0] }
  0x4b   :  { %697 = vmatpush.bf16.msra.mxu1 %v548_v27  ;;  %v1603_v27 = vor.u32 %v2153_v22, %v1600_v9  ;;  %v1923_v14 = vor.u32 %v2235_v12, %v1922_v53  ;;  %v2018_v9 = vld [vmem:[#allocation2 + $0x1f0] sm:$0xf] }
  0x4c   :  { %636 = vmatmul.bf16.vlgmr.msrb.gmra.mxu1 %v2594_v46 }
  0x4d   :  { %681 = vmatpush.bf16.msrb.mxu0 %v1699_v20  ;;  %v1874_v20 = vld [vmem:[#allocation2 + $0xd0] sm:$0xf] }
  0x4e   :  { %671 = vmatpush.bf16.msra.mxu2 %v1523_v30  ;;  %1105 = vmatpush.bf16.msra.mxu3 %v1819_v41  ;;  %v1875_v26 = vor.u32 %v2223_v21, %v1874_v20  ;;  %v1770_v30 = vld [vmem:[#allocation2] sm:$0xf]  ;;  %v1823_v41 = vor.u32 %v2208_v38, %v1820_v40  ;;  %v2233_v21 = vld [vmem:[#allocation2 + $0x124] sm:$0xf0]  ;;  %v2222_v38 = vld [vmem:[#allocation2 + $0xd4] sm:$0xf] }
  0x4f   :  { %698 = vmatpush.bf16.msra.mxu1 %v1763_v37  ;;  %v2243_v37 = vld [vmem:[#allocation2 + $0x174] sm:$0xf0]  ;;  %v1914_v20 = vld [vmem:[#allocation2 + $0x120] sm:$0xf] }
  0x50   :  { %v1955_v39 = vor.u32 %v2243_v37, %v1954_v36  ;;  %v1915_v22 = vor.u32 %v2233_v21, %v1914_v20  ;;  %v2879_v40 = vld [vmem:[%s2971_s2] sm:$0xf]  ;;  %v2249_v21 = vld [vmem:[#allocation2 + $0x1a4] sm:$0xf0] }
  0x51   :  { %682 = vmatpush.bf16.msrb.mxu0 %v1683_v35  ;;  %v1771_v35 = vor.u32 %v2197_v31, %v1770_v30  ;;  %v1906_v30 = vld [vmem:[#allocation2 + $0x110] sm:$0xf]  ;;  %v2231_v31 = vld [vmem:[#allocation2 + $0x114] sm:$0xf0]  ;;  %v1978_v20 = vld [vmem:[#allocation2 + $0x1a0] sm:$0xf] }
  0x52   :  { %672 = vmatpush.bf16.msra.mxu2 %v1507_v42  ;;  %1106 = vmatpush.bf16.msra.mxu3 %v1811_v55  ;;  %v1858_v42 = vld [vmem:[#allocation2 + $0xb0] sm:$0xf] }
  0x53   :  { %699 = vmatpush.bf16.msra.mxu1 %v1747_v51  ;;  %v1859_v44 = vor.u32 %v2219_v43, %v1858_v42  ;;  %v1850_v51 = vld [vmem:[#allocation2 + $0xa0] sm:$0xf]  ;;  %v1938_v55 = vld [vmem:[#allocation2 + $0x150] sm:$0xf] }
  0x54   :  { %v1851_v54 = vor.u32 %v2217_v52, %v1850_v51  ;;  %v1939_v59 = vor.u32 %v2239_v56, %v1938_v55  ;;  %v1898_v43 = vld [vmem:[#allocation2 + $0x100] sm:$0xf]  ;;  %v1956_v55 = vld [vmem:[#allocation2 + $0x178] sm:$0xf0] }
  0x55   :  { %683 = vmatpush.bf16.msrb.mxu0 %v1667_v48  ;;  %v2206_v48 = vld [vmem:[#allocation2 + $0x54] sm:$0xf] }
  0x56   :  { %673 = vmatpush.bf16.msra.mxu2 %v1491_v57  ;;  %1107 = vmatpush.bf16.msra.mxu3 %v1803_v4  ;;  %v2204_v57 = vld [vmem:[#allocation2 + $0x44] sm:$0xf] }
  0x57   :  { %700 = vmatpush.bf16.msra.mxu1 %v1731_v1  ;;  %v1807_v61 = vor.u32 %v2204_v57, %v1804_v60  ;;  %v1930_v1 = vld [vmem:[#allocation2 + $0x140] sm:$0xf]  ;;  %v2218_v60 = vld [vmem:[#allocation2 + $0xb4] sm:$0xf] }
  0x58   :  { %v1931_v4 = vor.u32 %v2237_v2, %v1930_v1  ;;  %v1994_v57 = vld [vmem:[#allocation2 + $0x1c0] sm:$0xf]  ;;  %v1948_v1 = vld [vmem:[#allocation2 + $0x168] sm:$0xf0] }
  0x59   :  { %684 = vmatpush.bf16.msrb.mxu0 %v1651_v0  ;;  %v1843_v0 = vor.u32 %v2215_v63, %v1842_v62  ;;  %v1860_v63 = vld [vmem:[#allocation2 + $0xb8] sm:$0xf0] }
  0x5a   :  { %674 = vmatpush.bf16.msra.mxu2 %v1475_v6  ;;  %1108 = vmatpush.bf16.msra.mxu3 %v1795_v15  ;;  %v1834_v6 = vld [vmem:[#allocation2 + $0x80] sm:$0xf]  ;;  %v1788_v15 = vld [vmem:[#allocation2 + $0x28] sm:$0xf0] }
  0x5b   :  { %1117 = vmatpush.bf16.msrb.mxu1 %v1891_v5  ;;  %v1796_v5 = vld [vmem:[#allocation2 + $0x38] sm:$0xf0] }
  0x5c   :  { %1767 = vmatmul.msk.bf16.vlgmr.msra.gmra.mxu1 %vm533_vm1, %v2519_v7  ;;  %v1831_v7 = vor.u32 %v2210_v32, %v1828_v33  ;;  %v1799_v10 = vor.u32 %v2202_v3, %v1796_v5  ;;  %v2010_v32 = vld [vmem:[#allocation2 + $0x1e0] sm:$0xf]  ;;  %v1907_v33 = vor.u32 %v2231_v31, %v1906_v30  ;;  %v1863_v3 = vor.u32 %v2218_v60, %v1860_v63  ;;  %v1970_v31 = vld [vmem:[#allocation2 + $0x190] sm:$0xf]  ;;  %v1900_v63 = vld [vmem:[#allocation2 + $0x108] sm:$0xf0] }
  0x5d   :  { %685 = vmatpush.bf16.msrb.mxu0 %v1635_v11  ;;  %675 = vmatmul.bf16.vlgmr.msra.gmra.mxu2 %v2594_v46  ;;  %v1866_v46 = vld [vmem:[#allocation2 + $0xc0] sm:$0xf]  ;;  %v1835_v11 = vor.u32 %v2213_v8, %v1834_v6  ;;  %v1986_v8 = vld [vmem:[#allocation2 + $0x1b0] sm:$0xf] }
  0x5e   :  { %1109 = vmatpush.bf16.msra.mxu3 %v1787_v23  ;;  %v1867_v34 = vor.u32 %v2221_v28, %v1866_v46  ;;  %1130 = vmatpush.bf16.msrb.mxu2 %v1955_v39  ;;  %v2259_v23 = vld [vmem:[#allocation2 + $0x1f4] sm:$0xf0]  ;;  %v1884_v46 = vld [vmem:[#allocation2 + $0xe8] sm:$0xf0]  ;;  %v1876_v39 = vld [vmem:[#allocation2 + $0xd8] sm:$0xf0] }
  0x5f   :  { %1118 = vmatpush.bf16.msrb.mxu1 %v1883_v18  ;;  %v1791_v18 = vor.u32 %v2200_v13, %v1788_v15  ;;  %v2019_v25 = vor.u32 %v2259_v23, %v2018_v9  ;;  %v1852_v13 = vld [vmem:[#allocation2 + $0xa8] sm:$0xf0]  ;;  %v1940_v15 = vld [vmem:[#allocation2 + $0x158] sm:$0xf0] }
  0x61   :  { %686 = vmatpush.bf16.msrb.mxu0 %v1619_v19  ;;  %v1895_v19 = vor.u32 %v2226_v16, %v1892_v17 }
  0x62   :  { %1110 = vmatpush.bf16.msra.mxu3 %v1779_v29  ;;  %1131 = vmatpush.bf16.msrb.mxu2 %v1947_v49  ;;  %v2220_v49 = vld [vmem:[#allocation2 + $0xc4] sm:$0xf] }
  0x63   :  { %1119 = vmatpush.bf16.msrb.mxu1 %v1875_v26  ;;  %v1780_v26 = vld [vmem:[#allocation2 + $0x18] sm:$0xf0] }
  0x64   :  { %v1783_v28 = vor.u32 %v2198_v24, %v1780_v26  ;;  %v1979_v24 = vor.u32 %v2249_v21, %v1978_v20  ;;  %v2236_v26 = vld [vmem:[#allocation2 + $0x144] sm:$0xf] }
  0x65   :  { %687 = vmatpush.bf16.msrb.mxu0 %v1603_v27  ;;  %v2224_v27 = vld [vmem:[#allocation2 + $0xe4] sm:$0xf] }
  0x66   :  { %1111 = vmatpush.bf16.msra.mxu3 %v1771_v35  ;;  %1132 = vmatpush.bf16.msrb.mxu2 %v1939_v59  ;;  %v1887_v29 = vor.u32 %v2224_v27, %v1884_v46  ;;  %v2196_v35 = vld [vmem:[#allocation2 + $0x4] sm:$0xf]  ;;  %v2253_v59 = vld [vmem:[#allocation2 + $0x1c4] sm:$0xf0]  ;;  %v1932_v46 = vld [vmem:[#allocation2 + $0x148] sm:$0xf0] }
  0x67   :  { %1120 = vmatpush.bf16.msrb.mxu1 %v1867_v34  ;;  %v2257_v34 = vld [vmem:[#allocation2 + $0x1e4] sm:$0xf0]  ;;  %v1995_v62 = vor.u32 %v2253_v59, %v1994_v57  ;;  %v2012_v59 = vld [vmem:[#allocation2 + $0x1e8] sm:$0xf0]  ;;  %v2248_v21 = vld [vmem:[#allocation2 + $0x1a4] sm:$0xf] }
  0x68   :  { %688 = vmatmul.bf16.vlgmr.msrb.gmra.mxu0 %v2622_v58  ;;  %v1815_v58 = vor.u32 %v2206_v48, %v1812_v50  ;;  %v2011_v36 = vor.u32 %v2257_v34, %v2010_v32  ;;  %v2255_v48 = vld [vmem:[#allocation2 + $0x1d4] sm:$0xf0]  ;;  %v1868_v50 = vld [vmem:[#allocation2 + $0xc8] sm:$0xf0] }
  0x69   :  { %1143 = vmatpush.bf16.msra.mxu0 %v2019_v25  ;;  %v2003_v51 = vor.u32 %v2255_v48, %v2002_v45  ;;  %v1871_v52 = vor.u32 %v2220_v49, %v1868_v50  ;;  %v1844_v25 = vld [vmem:[#allocation2 + $0x98] sm:$0xf0]  ;;  %v2247_v32 = vld [vmem:[#allocation2 + $0x194] sm:$0xf0]  ;;  %v1916_v45 = vld [vmem:[#allocation2 + $0x128] sm:$0xf0] }
  0x6a   :  { %1156 = vmatpush.bf16.msrb.mxu3 %v1831_v7  ;;  %1133 = vmatpush.bf16.msrb.mxu2 %v1931_v4  ;;  %v1772_v7 = vld [vmem:[#allocation2 + $0x8] sm:$0xf0]  ;;  %v1971_v34 = vor.u32 %v2247_v32, %v1970_v31  ;;  %v136_v49 = vperm.slane %v2879_v40, 1 }
  0x6b   :  { %1121 = vmatpush.bf16.msrb.mxu1 %v1859_v44  ;;  %v1775_v37 = vor.u32 %v2196_v35, %v1772_v7  ;;  %v2229_v44 = vld [vmem:[#allocation2 + $0x104] sm:$0xf0]  ;;  %v1836_v35 = vld [vmem:[#allocation2 + $0x88] sm:$0xf0]  ;;  %v2234_v7 = vld [vmem:[#allocation2 + $0x134] sm:$0xf] }
  0x6c   :  { %v1899_v47 = vor.u32 %v2229_v44, %v1898_v43  ;;  %v2232_v44 = vld [vmem:[#allocation2 + $0x124] sm:$0xf]  ;;  %v1964_v31 = vld [vmem:[#allocation2 + $0x188] sm:$0xf0] }
  0x6d   :  { %1144 = vmatpush.bf16.msra.mxu0 %v2011_v36  ;;  %v1924_v36 = vld [vmem:[#allocation2 + $0x138] sm:$0xf0]  ;;  %v1919_v50 = vor.u32 %v2232_v44, %v1916_v45 }
  0x6e   :  { %1157 = vmatpush.bf16.msrb.mxu3 %v1823_v41  ;;  %1134 = vmatpush.bf16.msrb.mxu2 %v1923_v14  ;;  %v1879_v41 = vor.u32 %v2222_v38, %v1876_v39  ;;  %v2238_v14 = vld [vmem:[#allocation2 + $0x154] sm:$0xf]  ;;  %v1927_v38 = vor.u32 %v2234_v7, %v1924_v36  ;;  %v138_v36 = vperm.slane %v2879_v40, 3 }
  0x6f   :  { %1122 = vmatpush.bf16.msrb.mxu1 %v1851_v54  ;;  %v2242_v54 = vld [vmem:[#allocation2 + $0x174] sm:$0xf]  ;;  %v1943_v17 = vor.u32 %v2238_v14, %v1940_v15 }
  0x70   :  { %v1959_v56 = vor.u32 %v2242_v54, %v1956_v55  ;;  %v1908_v54 = vld [vmem:[#allocation2 + $0x118] sm:$0xf0]  ;;  %v2256_v55 = vld [vmem:[#allocation2 + $0x1e4] sm:$0xf] }
  0x71   :  { %1145 = vmatpush.bf16.msra.mxu0 %v2003_v51  ;;  %v2015_v60 = vor.u32 %v2256_v55, %v2012_v59  ;;  %v2261_v59 = vld [vmem:[%s2974_s5 + $0x8] sm:$0xff] }
  0x72   :  { %1158 = vmatpush.bf16.msrb.mxu3 %v1815_v58  ;;  %1135 = vmatpush.bf16.msrb.mxu2 %v1915_v22  ;;  %v135_v58 = vperm.slane %v2879_v40, 0  ;;  %v2214_v22 = vld [vmem:[#allocation2 + $0x94] sm:$0xf] }
  0x73   :  { %1123 = vmatpush.bf16.msrb.mxu1 %v1843_v0  ;;  %v2240_v0 = vld [vmem:[#allocation2 + $0x164] sm:$0xf]  ;;  %v1847_v27 = vor.u32 %v2214_v22, %v1844_v25  ;;  %v1980_v22 = vld [vmem:[#allocation2 + $0x1a8] sm:$0xf0]  ;;  %v1972_v25 = vld [vmem:[#allocation2 + $0x198] sm:$0xf0] }
  0x74   :  { %v1951_v4 = vor.u32 %v2240_v0, %v1948_v1  ;;  %v2254_v0 = vld [vmem:[#allocation2 + $0x1d4] sm:$0xf] }
  0x75   :  { %1146 = vmatpush.bf16.msra.mxu0 %v1995_v62  ;;  %v2228_v62 = vld [vmem:[#allocation2 + $0x104] sm:$0xf] }
  0x76   :  { %1159 = vmatpush.bf16.msrb.mxu3 %v1807_v61  ;;  %1136 = vmatpush.bf16.msrb.mxu2 %v1907_v33  ;;  %v2212_v33 = vld [vmem:[#allocation2 + $0x84] sm:$0xf] }
  0x77   :  { %1124 = vmatpush.bf16.msrb.mxu1 %v1835_v11  ;;  %v2216_v11 = vld [vmem:[#allocation2 + $0xa4] sm:$0xf] }
  0x78   :  { %v1855_v16 = vor.u32 %v2216_v11, %v1852_v13 }
  0x7a   :  { %1160 = vmatpush.bf16.msrb.mxu3 %v1799_v10  ;;  %1137 = vmatpush.bf16.msrb.mxu2 %v1899_v47  ;;  %v2251_v10 = vld [vmem:[#allocation2 + $0x1b4] sm:$0xf0]  ;;  %v2258_v47 = vld [vmem:[#allocation2 + $0x1f4] sm:$0xf] }
  0x7b   :  { %1169 = vmatpush.bf16.msra.mxu1 %v1895_v19  ;;  %v1987_v12 = vor.u32 %v2251_v10, %v1986_v8  ;;  %v2252_v8 = vld [vmem:[#allocation2 + $0x1c4] sm:$0xf]  ;;  %v1996_v10 = vld [vmem:[#allocation2 + $0x1c8] sm:$0xf0] }
  0x7d   :  { %1147 = vmatpush.bf16.msra.mxu0 %v1987_v12  ;;  %v137_v12 = vperm.slane %v2879_v40, 2  ;;  %v2266_v40 = vld [vmem:[%s2974_s5 + $0x30] sm:$0xff] }
  0x7e   :  { %1161 = vmatpush.bf16.msrb.mxu3 %v1791_v18  ;;  %1182 = vmatpush.bf16.msra.mxu2 %v1959_v56 }
  0x7f   :  { %1170 = vmatpush.bf16.msra.mxu1 %v1887_v29  ;;  %v1935_v29 = vor.u32 %v2236_v26, %v1932_v46 }
  0x81   :  { %1148 = vmatpush.bf16.msra.mxu0 %v1979_v24  ;;  %v2246_v24 = vld [vmem:[#allocation2 + $0x194] sm:$0xf] }
  0x82   :  { %1162 = vmatpush.bf16.msrb.mxu3 %v1783_v28  ;;  %1183 = vmatpush.bf16.msra.mxu2 %v1951_v4  ;;  %v2004_v4 = vld [vmem:[#allocation2 + $0x1d8] sm:$0xf0] }
  0x83   :  { %1171 = vmatpush.bf16.msra.mxu1 %v1879_v41  ;;  %v1962_v41 = vld [vmem:[#allocation2 + $0x180] sm:$0xf] }
  0x85   :  { %1149 = vmatpush.bf16.msra.mxu0 %v1971_v34 }
  0x86   :  { %1163 = vmatpush.bf16.msrb.mxu3 %v1775_v37  ;;  %1184 = vmatpush.bf16.msra.mxu2 %v1943_v17  ;;  %v1839_v37 = vor.u32 %v2212_v33, %v1836_v35  ;;  %v1988_v17 = vld [vmem:[#allocation2 + $0x1b8] sm:$0xf0] }
  0x87   :  { %1172 = vmatpush.bf16.msra.mxu1 %v1871_v52  ;;  %v2230_v52 = vld [vmem:[#allocation2 + $0x114] sm:$0xf] }
  0x88   :  { %v1911_v57 = vor.u32 %v2230_v52, %v1908_v54  ;;  %v2263_v52 = vld [vmem:[%s2974_s5 + $0x18] sm:$0xff] }
  0x89   :  { %v2275_v54 = vld [vmem:[%s2974_s5 + $0x78] sm:$0xff] }
  0x8a   :  { %1185 = vmatpush.bf16.msra.mxu2 %v1935_v29 }
  0x8b   :  { %1173 = vmatpush.bf16.msra.mxu1 %v1863_v3  ;;  %v1903_v3 = vor.u32 %v2228_v62, %v1900_v63  ;;  %v2260_v63 = vld [vmem:[%s2974_s5] sm:$0xff] }
  0x8e   :  { %1186 = vmatpush.bf16.msra.mxu2 %v1927_v38 }
  0x8f   :  { %1174 = vmatpush.bf16.msra.mxu1 %v1855_v16  ;;  %v2250_v16 = vld [vmem:[#allocation2 + $0x1b4] sm:$0xf] }
  0x92   :  { %1187 = vmatpush.bf16.msra.mxu2 %v1919_v50  ;;  %v2265_v50 = vld [vmem:[%s2974_s5 + $0x28] sm:$0xff] }
  0x93   :  { %1175 = vmatpush.bf16.msra.mxu1 %v1847_v27 }
  0x96   :  { %1188 = vmatpush.bf16.msra.mxu2 %v1911_v57  ;;  %v2274_v57 = vld [vmem:[%s2974_s5 + $0x70] sm:$0xff] }
  0x97   :  { %1176 = vmatpush.bf16.msra.mxu1 %v1839_v37 }
  0x9a   :  { %1189 = vmatpush.bf16.msra.mxu2 %v1903_v3 }
  0xa0   :  { %v585_v42 = vpop.f32.mrf.mxu2 }
  0xa5   :  { %v559_v61 = vpop.f32.mrf.mxu0 }
  0xa6   :  { %v560_v2 = vadd.f32 %v559_v61, %v135_v58  ;;  %v2020_v58 = vld [vmem:[#allocation2 + $0x1f8] sm:$0xf0] }
  0xa7   :  { %v2023_v51 = vor.u32 %v2258_v47, %v2020_v58 }
  0xa8   :  { %v587_v6 = vpop.f32.mrf.mxu2 }
  0xa9   :  { %v572_v5 = vpop.f32.mrf.mxu1 }
  0xaa   :  { %v573_v53 = vadd.f32 %v572_v5, %v560_v2  ;;  %v2007_v5 = vor.u32 %v2254_v0, %v2004_v4  ;;  %v2272_v0 = vld [vmem:[%s2974_s5 + $0x60] sm:$0xff]  ;;  %v2270_v4 = vld [vmem:[%s2974_s5 + $0x50] sm:$0xff] }
  0xac   :  { %v586_v18 = vadd.f32 %v585_v42, %v573_v53  ;;  %v598_v19 = vpop.f32.mrf.mxu3  ;;  %v2245_v42 = vld [vmem:[#allocation2 + $0x184] sm:$0xf0]  ;;  %v1999_v53 = vor.u32 %v2252_v8, %v1996_v10  ;;  %v2268_v10 = vld [vmem:[%s2974_s5 + $0x40] sm:$0xff] }
  0xad   :  { %v561_v23 = vpop.f32.mrf.mxu0  ;;  %v1963_v43 = vor.u32 %v2245_v42, %v1962_v41  ;;  %v599_v56 = vadd.f32 %v598_v19, %v136_v49  ;;  %v1991_v19 = vor.u32 %v2250_v16, %v1988_v17  ;;  %v2267_v49 = vld [vmem:[%s2974_s5 + $0x38] sm:$0xff] }
  0xae   :  { %v706_v9 = vmax.f32 %v586_v18, 0.0 }
  0xaf   :  { %1150 = vmatpush.bf16.msra.mxu0 %v1963_v43 }
  0xb0   :  { %v710_v28 = vpack.c.bf16 %v706_v9, %v706_v9  ;;  %v1983_v9 = vor.u32 %v2248_v21, %v1980_v22 }
  0xb1   :  { %v574_v30 = vpop.f32.mrf.mxu1 }
  0xb2   :  { %1112 = vmatmul.bf16.vlgmr.msra.gmra.mxu3 %v710_v28  ;;  %v2244_v30 = vld [vmem:[#allocation2 + $0x184] sm:$0xf] }
  0xb3   :  { %1195 = vmatpush.bf16.msrb.mxu0 %v2023_v51  ;;  %v1967_v34 = vor.u32 %v2244_v30, %v1964_v31  ;;  %1344 = vmatpush.bf16.msra.mxu3 %v2267_v49  ;;  %v2264_v51 = vld [vmem:[%s2974_s5 + $0x20] sm:$0xff] }
  0xb4   :  { %v600_v39 = vpop.f32.mrf.mxu3  ;;  %v2288_v49 = vld [vmem:[%s2977_s8] ss:$0 sm:$0xff] }
  0xb5   :  { %v624_v48 = vpop.f32.mrf.mxu0 }
  0xb7   :  { %1196 = vmatpush.bf16.msrb.mxu0 %v2015_v60  ;;  %1345 = vmatpush.bf16.msra.mxu3 %v2266_v40  ;;  %v2273_v60 = vld [vmem:[%s2974_s5 + $0x68] sm:$0xff] }
  0xbb   :  { %1197 = vmatpush.bf16.msrb.mxu0 %v2007_v5  ;;  %1346 = vmatpush.bf16.msra.mxu3 %v2265_v50  ;;  %v2269_v5 = vld [vmem:[%s2974_s5 + $0x48] sm:$0xff] }
  0xbd   :  { %v626_v2 = vpop.f32.mrf.mxu0 }
  0xbf   :  { %1198 = vmatpush.bf16.msrb.mxu0 %v1999_v53  ;;  %1347 = vmatpush.bf16.msra.mxu3 %v2264_v51 }
  0xc0   :  { %v611_v61 = vpop.f32.mrf.mxu2 }
  0xc1   :  { %v612_v1 = vadd.f32 %v611_v61, %v599_v56  ;;  %v2262_v56 = vld [vmem:[%s2974_s5 + $0x10] sm:$0xff] }
  0xc2   :  { %1164 = vmatmul.bf16.vlgmr.msrb.gmra.mxu3 %v710_v28  ;;  %v1975_v28 = vor.u32 %v2246_v24, %v1972_v25 }
  0xc3   :  { %v625_v6 = vadd.f32 %v624_v48, %v612_v1  ;;  %1199 = vmatpush.bf16.msrb.mxu0 %v1991_v19  ;;  %1348 = vmatpush.bf16.msra.mxu3 %v2263_v52  ;;  %v2271_v1 = vld [vmem:[%s2974_s5 + $0x58] sm:$0xff] }
  0xc5   :  { %v707_v11 = vmax.f32 %v625_v6, 0.0  ;;  %v663_v18 = vpop.f32.mrf.mxu0 }
  0xc7   :  { %v711_v13 = vpack.c.bf16 %v707_v11, %v707_v11  ;;  %1200 = vmatpush.bf16.msrb.mxu0 %v1983_v9  ;;  %1349 = vmatpush.bf16.msra.mxu3 %v2262_v56  ;;  %v778_v11 = vld [vmem:[%s2973_s4] sm:$0x3] }
  0xc8   :  { %v613_v15 = vpop.f32.mrf.mxu2  ;;  %v780_v53 = vperm.slane %v778_v11, 0  ;;  %v2280_v9 = vld [vmem:[%s2976_s7 + $0x20] sm:$0xff]  ;;  %v781_v25 = vperm.slane %v778_v11, 1 }
  0xc9   :  { %v637_v14 = vpop.f32.mrf.mxu1  ;;  %1125 = vmatmul.bf16.vlgmr.msrb.gmra.mxu1 %v711_v13  ;;  %v2282_v15 = vld [vmem:[%s2976_s7 + $0x30] sm:$0xff] }
  0xca   :  { %v638_v20 = vadd.f32 %v637_v14, %v137_v12  ;;  %1357 = vmatpush.bf16.msrb.mxu1 %v2275_v54 }
  0xcb   :  { %1201 = vmatpush.bf16.msrb.mxu0 %v1975_v28  ;;  %1350 = vmatpush.bf16.msra.mxu3 %v2261_v59 }
  0xcc   :  { %v650_v23 = vpop.f32.mrf.mxu3 }
  0xcd   :  { %v651_v26 = vadd.f32 %v650_v23, %v638_v20  ;;  %v665_v29 = vpop.f32.mrf.mxu0 }
  0xce   :  { %1358 = vmatpush.bf16.msrb.mxu1 %v2274_v57 }
  0xcf   :  { %v664_v27 = vadd.f32 %v663_v18, %v651_v26  ;;  %1202 = vmatpush.bf16.msrb.mxu0 %v1967_v34  ;;  %1351 = vmatpush.bf16.msra.mxu3 %v2260_v63  ;;  %v2281_v18 = vld [vmem:[%s2976_s7 + $0x28] sm:$0xff] }
  0xd1   :  { %v639_v46 = vpop.f32.mrf.mxu1  ;;  %v708_v32 = vmax.f32 %v664_v27, 0.0 }
  0xd2   :  { %1359 = vmatpush.bf16.msrb.mxu1 %v2273_v60 }
  0xd3   :  { %v712_v33 = vpack.c.bf16 %v708_v32, %v708_v32 }
  0xd4   :  { %v652_v35 = vpop.f32.mrf.mxu3 }
  0xd5   :  { %1138 = vmatmul.bf16.vlgmr.msrb.gmra.mxu2 %v712_v33  ;;  %v2279_v35 = vld [vmem:[%s2976_s7 + $0x18] sm:$0xff] }
  0xd6   :  { %1360 = vmatpush.bf16.msrb.mxu1 %v2272_v0 }
  0xd9   :  { %v702_v7 = vpop.f32.mrf.mxu1  ;;  %1177 = vmatmul.bf16.vlgmr.msra.gmra.mxu1 %v711_v13  ;;  %v2283_v13 = vld [vmem:[%s2976_s7 + $0x38] sm:$0xff] }
  0xda   :  { %1361 = vmatpush.bf16.msrb.mxu1 %v2271_v1  ;;  %1440 = vmatpush.bf16.msrb.mxu2 %v2283_v13 }
  0xde   :  { %1362 = vmatpush.bf16.msrb.mxu1 %v2270_v4  ;;  %1441 = vmatpush.bf16.msrb.mxu2 %v2282_v15 }
  0xe0   :  { %v676_v37 = vpop.f32.mrf.mxu2 }
  0xe1   :  { %v677_v38 = vadd.f32 %v676_v37, %v138_v36  ;;  %v704_v39 = vpop.f32.mrf.mxu1  ;;  %v2277_v36 = vld [vmem:[%s2976_s7 + $0x8] sm:$0xff]  ;;  %v2276_v37 = vld [vmem:[%s2976_s7] sm:$0xff] }
  0xe2   :  { %1363 = vmatpush.bf16.msrb.mxu1 %v2269_v5  ;;  %1442 = vmatpush.bf16.msrb.mxu2 %v2281_v18  ;;  %v2287_v39 = vld [vmem:[%s2975_s6] ss:$0 sm:$0xff] }
  0xe5   :  { %v689_v41 = vpop.f32.mrf.mxu0  ;;  %1190 = vmatmul.bf16.vlgmr.msra.gmra.mxu2 %v712_v33 }
  0xe6   :  { %v690_v42 = vadd.f32 %v689_v41, %v677_v38  ;;  %1364 = vmatpush.bf16.msrb.mxu1 %v2268_v10  ;;  %1443 = vmatpush.bf16.msrb.mxu2 %v2280_v9 }
  0xe8   :  { %v703_v43 = vadd.f32 %v702_v7, %v690_v42  ;;  %v678_v44 = vpop.f32.mrf.mxu2  ;;  %v2278_v7 = vld [vmem:[%s2976_s7 + $0x10] sm:$0xff] }
  0xea   :  { %v709_v45 = vmax.f32 %v703_v43, 0.0  ;;  %1444 = vmatpush.bf16.msrb.mxu2 %v2279_v35 }
  0xec   :  { %v713_v47 = vpack.c.bf16 %v709_v45, %v709_v45 }
  0xed   :  { %v691_v48 = vpop.f32.mrf.mxu0 }
  0xee   :  { %1151 = vmatmul.bf16.vlgmr.msra.gmra.mxu0 %v713_v47  ;;  %1445 = vmatpush.bf16.msrb.mxu2 %v2278_v7 }
  0xf2   :  { %1446 = vmatpush.bf16.msrb.mxu2 %v2277_v36 }
  0xf6   :  { %1447 = vmatpush.bf16.msrb.mxu2 %v2276_v37 }
  0xfe   :  { %1203 = vmatmul.bf16.vlgmr.msrb.gmra.mxu0 %v713_v47 }
 0x135   :  { %v1113_v58 = vpop.f32.mrf.mxu3 }
 0x136   :  { %v1114_v16 = vadd.f32 %v1113_v58, %v780_v53 }
 0x13d   :  { %v1115_v55 = vpop.f32.mrf.mxu3 }
 0x145   :  { %v1165_v62 = vpop.f32.mrf.mxu3 }
 0x146   :  { %v1126_v61 = vpop.f32.mrf.mxu1  ;;  %v1166_v46 = vadd.f32 %v1165_v62, %v781_v25 }
 0x147   :  { %v1127_v17 = vadd.f32 %v1126_v61, %v1114_v16 }
 0x14d   :  { %v1167_v3 = vpop.f32.mrf.mxu3 }
 0x14e   :  { %v1128_v2 = vpop.f32.mrf.mxu1 }
 0x156   :  { %v1178_v6 = vpop.f32.mrf.mxu1 }
 0x157   :  { %v1179_v28 = vadd.f32 %v1178_v6, %v1166_v46 }
 0x158   :  { %v1139_v8 = vpop.f32.mrf.mxu2 }
 0x159   :  { %v1140_v19 = vadd.f32 %v1139_v8, %v1127_v17 }
 0x15e   :  { %v1180_v12 = vpop.f32.mrf.mxu1 }
 0x160   :  { %v1141_v14 = vpop.f32.mrf.mxu2 }
 0x168   :  { %v1191_v22 = vpop.f32.mrf.mxu2 }
 0x169   :  { %v1192_v29 = vadd.f32 %v1191_v22, %v1179_v28 }
 0x16b   :  { %v1152_v20 = vpop.f32.mrf.mxu0 }
 0x16c   :  { %v1153_v21 = vadd.f32 %v1152_v20, %v1140_v19 }
 0x16e   :  { %v1208_v23 = vmax.f32 %v1153_v21, 0.0 }
 0x170   :  { %v1210_v24 = vpack.c.bf16 %v1208_v23, %v1208_v23  ;;  %v1193_v27 = vpop.f32.mrf.mxu2 }
 0x172   :  { %1352 = vmatmul.bf16.vlgmr.msra.gmra.mxu3 %v1210_v24 }
 0x173   :  { %v1154_v26 = vpop.f32.mrf.mxu0 }
 0x17b   :  { %v1204_v30 = vpop.f32.mrf.mxu0 }
 0x17c   :  { %v1205_v31 = vadd.f32 %v1204_v30, %v1192_v29 }
 0x17e   :  { %v1209_v32 = vmax.f32 %v1205_v31, 0.0 }
 0x180   :  { %v1211_v33 = vpack.c.bf16 %v1209_v32, %v1209_v32 }
 0x182   :  { %1365 = vmatmul.bf16.vlgmr.msrb.gmra.mxu1 %v1211_v33 }
 0x183   :  { %v1206_v34 = vpop.f32.mrf.mxu0 }
 0x1f5   :  { %v1353_v38 = vpop.f32.mrf.mxu3 }
 0x1f6   :  { %v1354_v42 = vadd.f32 %v2287_v39, %v1353_v38 }
 0x1fd   :  { %v1355_v41 = vpop.f32.mrf.mxu3 }
 0x1ff   :  { %v1366_v43 = vpop.f32.mrf.mxu1 }
 0x200   :  { %v1367_v44 = vadd.f32 %v1366_v43, %v1354_v42 }
 0x202   :  { %v1370_v45 = vmax.f32 %v1367_v44, 0.0 }
 0x204   :  { %v1371_v47 = vpack.c.bf16 %v1370_v45, %v1370_v45 }
 0x206   :  { %1448 = vmatmul.bf16.vlgmr.msrb.gmra.mxu2 %v1371_v47 }
 0x207   :  { %v1368_v48 = vpop.f32.mrf.mxu1 }
 0x289   :  { %v1449_v40 = vpop.f32.mrf.mxu2 }
 0x28a   :  { %v1450_v50 = vadd.f32 %v2288_v49, %v1449_v40 }
 0x28c   :  { %v1453_v58 = vpack.c.bf16 %v1450_v50, %v1450_v50 }
 0x28e   :  { %1454 = vst [vmem:[%s2978_s9] sm:$0xf] %v1453_v58 }
 0x291   :  { %v1451_v51 = vpop.f32.mrf.mxu2 }
 0x292   :  { %1459 = vsyncpa [#allocation3], 1 }

</bundles_post_ra>
